<compile_context>
chip_gen: v6e
topology: v6e:2x2x1
jax: 0.10.0
libtpu: 0.0.40
codegen_flags: <defaults>
</compile_context>

<pallas_src>
import functools
import math

import jax
import jax.numpy as jnp
from jax.experimental import pallas as pl
from jax.experimental.pallas import tpu as pltpu


def _round_up(x, m):
    return (x + m - 1) // m * m


def _sublane_multiple(dtype):
    # f32 -> 8, bf16 -> 16, int8/fp8 -> 32 (sub-32-bit dtypes pack sublanes).
    return max(8, 32 // jnp.dtype(dtype).itemsize)


def _generation_defaults():
    """Returns (target padded block bytes per buffer, vmem_limit_bytes)."""
    try:
        kind = jax.devices()[0].device_kind.lower()
    except Exception:
        kind = ""
    if "v7" in kind:
        # 64 MiB physical VMEM / TC, 3.2 TB/s HBM: larger blocks amortize the
        # ~0.35us per-step overhead; keep headroom under the 64 MiB ceiling.
        return 3 * 1024 * 1024, 48 * 1024 * 1024
    if "v6" in kind:
        return 4 * 1024 * 1024, 64 * 1024 * 1024
    if "v5" in kind:
        return 2 * 1024 * 1024, 64 * 1024 * 1024
    # Unknown backend (e.g. interpret mode): conservative defaults.
    return 2 * 1024 * 1024, 48 * 1024 * 1024


def _softmax_sublane_kernel(x_ref, o_ref):
    # (outer_tile, C, lane_tile) tiles; softmax along axis=1 (sublanes); the
    # large independent `inner` dim stays on lanes -> lane-dense stores.
    x = x_ref[...].astype(jnp.float32)
    m = jnp.max(x, axis=1, keepdims=True)
    p = jnp.exp(x - m)
    s = jnp.sum(p, axis=1, keepdims=True)
    o_ref[...] = (p / s).astype(o_ref.dtype)   # exact divide; kernel is HBM-bound


def _softmax_lane_kernel(x_ref, o_ref):
    # (row_tile, D) tiles; softmax along the last (lane) axis.  Used only when
    # `dim` is already the last axis (no transpose would be needed anyway).
    x = x_ref[...].astype(jnp.float32)
    m = jnp.max(x, axis=-1, keepdims=True)
    p = jnp.exp(x - m)
    s = jnp.sum(p, axis=-1, keepdims=True)
    o_ref[...] = (p / s).astype(o_ref.dtype)


@functools.partial(jax.jit, static_argnames=("dim",))
def leaky_softmax(x, dim):
    ndim = x.ndim
    dim = dim % ndim
    shape = x.shape
    C = shape[dim]
    outer = math.prod(shape[:dim])
    inner = math.prod(shape[dim + 1:])

    itemsize = jnp.dtype(x.dtype).itemsize
    sub = _sublane_multiple(x.dtype)
    target_bytes, vmem_limit = _generation_defaults()

    if dim == ndim - 1:
        # Softmax axis is already last -> 2D row-softmax, reduce over lanes.
        rows, D = outer, C
        x2d = x.reshape(rows, D)                       # free reshape, no copy
        # Byte-accurate row_tile: lanes pad D up to a 128 multiple in VMEM.
        D_pad = _round_up(D, 128)
        row_tile = max(1, min(rows, target_bytes // (D_pad * itemsize)))
        if row_tile < rows:
            row_tile = max(sub, (row_tile // sub) * sub)   # dtype sublane multiple
        # TODO(synk): D < 128 leaves lanes sparse (masked vst.msk stores); a
        # rows-on-lanes layout would be faster for tiny D.
        # TODO(synk): for D so large that a (sub, D) f32 block exceeds VMEM,
        # add a reduction grid axis with an online-softmax accumulator.
        grid = (pl.cdiv(rows, row_tile),)
        out2d = pl.pallas_call(
            _softmax_lane_kernel,
            out_shape=jax.ShapeDtypeStruct((rows, D), x.dtype),
            grid_spec=pltpu.PrefetchScalarGridSpec(
                num_scalar_prefetch=0,
                grid=grid,
                in_specs=[pl.BlockSpec((row_tile, D), lambda i: (i, 0))],
                out_specs=pl.BlockSpec((row_tile, D), lambda i: (i, 0)),
            ),
            compiler_params=pltpu.CompilerParams(
                dimension_semantics=("parallel",),
                vmem_limit_bytes=vmem_limit,
            ),
        )(x2d)
        return out2d.reshape(shape)

    # Interior softmax axis (e.g. NCHW dim=1): metadata-only view (outer, C, inner),
    # no HBM transpose / copy on either side of the kernel.
    x3d = x.reshape(outer, C, inner)
    C_pad = _round_up(C, sub)                          # sublane pad of the softmax axis

    if inner <= 128:
        lane_tile = inner                              # full extent (legal)
        # TODO(synk): inner < 128 is lane-sparse; pad upstream or pick another
        # layout if such shapes become hot.
    else:
        # Keep each strided HBM DMA row >= 2 KiB, even past the byte target.
        lane_floor = _round_up(2048 // itemsize, 128)  # 512 f32 / 1024 bf16 lanes
        lane_target = max(128, (target_bytes // (C_pad * itemsize)) // 128 * 128)
        lane_tile = max(lane_floor, lane_target)
        lane_tile = min(lane_tile, _round_up(inner, 128))   # 128-multiple; boundary masked
    per_outer_bytes = C_pad * _round_up(lane_tile, 128) * itemsize   # padded VMEM bytes
    outer_tile = max(1, min(outer, target_bytes // per_outer_bytes))

    grid = (pl.cdiv(outer, outer_tile), pl.cdiv(inner, lane_tile))

    out3d = pl.pallas_call(
        _softmax_sublane_kernel,
        out_shape=jax.ShapeDtypeStruct((outer, C, inner), x.dtype),
        grid_spec=pltpu.PrefetchScalarGridSpec(
            num_scalar_prefetch=0,
            grid=grid,
            in_specs=[pl.BlockSpec((outer_tile, C, lane_tile),
                                   lambda o, l: (o, 0, l))],
            out_specs=pl.BlockSpec((outer_tile, C, lane_tile),
                                   lambda o, l: (o, 0, l)),
        ),
        compiler_params=pltpu.CompilerParams(
            dimension_semantics=("parallel", "parallel"),
            vmem_limit_bytes=vmem_limit,
        ),
    )(x3d)
    return out3d.reshape(shape)


if __name__ == "__main__":
    key = jax.random.PRNGKey(0)
    # NCHW-style input, softmax over the channel axis (dim=1).
    x = jax.random.normal(key, (2, 4, 16, 16), dtype=jnp.float32)

    out = jax.block_until_ready(leaky_softmax(x, dim=1))
    ref = jax.nn.softmax(x, axis=1)
    assert out.shape == x.shape and out.dtype == x.dtype
    assert jnp.max(jnp.abs(out - ref)) < 1e-5, float(jnp.max(jnp.abs(out - ref)))

    # Also exercise the dim == last-axis path.
    out2 = jax.block_until_ready(leaky_softmax(x, dim=-1))
    ref2 = jax.nn.softmax(x, axis=-1)
    assert jnp.max(jnp.abs(out2 - ref2)) < 1e-5, float(jnp.max(jnp.abs(out2 - ref2)))

    print("KERNEL_OK")
</pallas_src>

<mosaic_0001>
module attributes {stable_mosaic.version = 11 : i64} {
  func.func @_softmax_sublane_kernel(%arg0: i32, %arg1: i32, %arg2: memref<2x4x256xf32, #tpu.memory_space<vmem>>, %arg3: memref<2x4x256xf32, #tpu.memory_space<vmem>>) attributes {dimension_semantics = [#tpu.dimension_semantics<parallel>, #tpu.dimension_semantics<parallel>], iteration_bounds = array<i64: 1, 1>, scalar_prefetch = 0 : i64, scratch_operands = 0 : i64, tpu.core_type = #tpu.core_type<tc>, window_params = [{transform_indices = @transform_0, window_bounds = array<i64: 2, 4, 256>}, {transform_indices = @transform_1, window_bounds = array<i64: 2, 4, 256>}]} {
    %c0 = arith.constant 0 : index
    %c0_0 = arith.constant 0 : index
    %c0_1 = arith.constant 0 : index
    %0 = vector.load %arg2[%c0, %c0_0, %c0_1] : memref<2x4x256xf32, #tpu.memory_space<vmem>>, vector<2x4x256xf32>
    %cst = arith.constant dense<0xFF800000> : vector<2x256xf32>
    %1 = vector.multi_reduction <maximumf>, %0, %cst [1] : vector<2x4x256xf32> to vector<2x256xf32>
    %2 = vector.shape_cast %1 : vector<2x256xf32> to vector<2x1x256xf32>
    %3 = vector.broadcast %2 : vector<2x1x256xf32> to vector<2x4x256xf32>
    %4 = arith.subf %0, %3 : vector<2x4x256xf32>
    %5 = math.exp %4 : vector<2x4x256xf32>
    %cst_2 = arith.constant dense<0.000000e+00> : vector<2x256xf32>
    %6 = vector.multi_reduction <add>, %5, %cst_2 [1] : vector<2x4x256xf32> to vector<2x256xf32>
    %7 = vector.shape_cast %6 : vector<2x256xf32> to vector<2x1x256xf32>
    %8 = vector.broadcast %7 : vector<2x1x256xf32> to vector<2x4x256xf32>
    %9 = arith.divf %5, %8 : vector<2x4x256xf32>
    %c0_3 = arith.constant 0 : index
    %c0_4 = arith.constant 0 : index
    %c0_5 = arith.constant 0 : index
    %10 = vector.load %arg3[%c0_3, %c0_4, %c0_5] : memref<2x4x256xf32, #tpu.memory_space<vmem>>, vector<2x4x256xf32>
    tpu.vector_store %arg3[%c0_3, %c0_4, %c0_5], %9 {strides = array<i32>} : memref<2x4x256xf32, #tpu.memory_space<vmem>>, vector<2x4x256xf32>,
    return
  }
  func.func @transform_0(%arg0: i32, %arg1: i32) -> (i32, i32, i32) {
    %c0_i32 = arith.constant 0 : i32
    %c0_i32_0 = arith.constant 0 : i32
    return %arg0, %c0_i32, %arg1 : i32, i32, i32
  }
  func.func @transform_1(%arg0: i32, %arg1: i32) -> (i32, i32, i32) {
    %c0_i32 = arith.constant 0 : i32
    %c0_i32_0 = arith.constant 0 : i32
    return %arg0, %c0_i32, %arg1 : i32, i32, i32
  }
}

</mosaic_0001>

<bundles_post_ra>
// kernel: leaky_softmax.1
= control target key start
LH: loop header
LB: loop body
LE: loop exit
PB: predicated region body
PF: predicated region fallthrough
CT: control target
= control target key end

     0   :  { %vm16_vm0 = vcmask 1043456   ;;  %s151_s0 = inlined_call_operand.vmem [shape: f32[2,4,256], index: 0, kind: input, shape index: {}]   ;;  %s152_s1 = inlined_call_operand.vmem [shape: f32[2,4,256], index: 1, kind: output, shape index: {}]  }
   0x1   :  { %v8_v0 = vld [vmem:[%s151_s0] sm:$0xff]  ;;  %v9_v1 = vld [vmem:[%s151_s0 + $0x8] sm:$0xff] }
   0x2   :  { %v12_v2 = vcombine.high %v8_v0, %v8_v0  ;;  %v17_v3 = vsel %vm16_vm0, %v8_v0, -inf  ;;  %v13_v4 = vcombine.high %v9_v1, %v9_v1  ;;  %v31_v5 = vsel %vm16_vm0, %v9_v1, -inf }
   0x3   :  { %v18_v6 = vrot.slane %v17_v3, 4  ;;  %v32_v7 = vrot.slane %v31_v5, 4 }
   0x4   :  { %v24_v8 = vsel %vm16_vm0, %v12_v2, -inf  ;;  %v38_v9 = vsel %vm16_vm0, %v13_v4, -inf }
   0x5   :  { %v19_v10 = vmax.f32 %v17_v3, %v18_v6  ;;  %v25_v11 = vrot.slane %v24_v8, 4  ;;  %v33_v12 = vmax.f32 %v31_v5, %v32_v7  ;;  %v39_v13 = vrot.slane %v38_v9, 4 }
   0x7   :  { %v20_v14 = vrot.slane %v19_v10, 2  ;;  %v26_v15 = vmax.f32 %v24_v8, %v25_v11  ;;  %v34_v16 = vrot.slane %v33_v12, 2  ;;  %v40_v17 = vmax.f32 %v38_v9, %v39_v13 }
   0x9   :  { %v21_v18 = vmax.f32 %v19_v10, %v20_v14  ;;  %v27_v19 = vrot.slane %v26_v15, 2  ;;  %v35_v20 = vmax.f32 %v33_v12, %v34_v16  ;;  %v41_v21 = vrot.slane %v40_v17, 2 }
   0xb   :  { %v22_v22 = vrot.slane %v21_v18, 1  ;;  %v28_v23 = vmax.f32 %v26_v15, %v27_v19  ;;  %v36_v24 = vrot.slane %v35_v20, 1  ;;  %v42_v25 = vmax.f32 %v40_v17, %v41_v21 }
   0xd   :  { %v23_v26 = vmax.f32 %v21_v18, %v22_v22  ;;  %v29_v27 = vrot.slane %v28_v23, 1  ;;  %v37_v28 = vmax.f32 %v35_v20, %v36_v24  ;;  %v43_v29 = vrot.slane %v42_v25, 1 }
   0xf   :  { %v30_v30 = vmax.f32 %v28_v23, %v29_v27  ;;  %v44_v31 = vmax.f32 %v42_v25, %v43_v29 }
  0x11   :  { %v49_v32 = vcombine.low %v23_v26, %v30_v30  ;;  %v50_v33 = vcombine.low %v37_v28, %v44_v31 }
  0x13   :  { %v53_v34 = vsub.f32 %v8_v0, %v49_v32  ;;  %v54_v35 = vsub.f32 %v9_v1, %v50_v33 }
  0x15   :  { %v55_v36 = vmul.f32 1.442695, %v53_v34  ;;  %v57_v37 = vmul.f32 1.442695, %v54_v35 }
  0x17   :  { %113 = vpow2.f32 %v55_v36 }
  0x18   :  { %115 = vpow2.f32 %v57_v37 }
  0x24   :  { %v114_v38 = vpop.eup %113 }
  0x25   :  { %v116_v39 = vpop.eup %115  ;;  %v61_v40 = vcombine.high %v114_v38, %v114_v38  ;;  %v65_v41 = vsel %vm16_vm0, %v114_v38, 0.0 }
  0x26   :  { %v66_v42 = vrot.slane %v65_v41, 4  ;;  %v62_v43 = vcombine.high %v116_v39, %v116_v39  ;;  %v79_v44 = vsel %vm16_vm0, %v116_v39, 0.0 }
  0x27   :  { %v72_v45 = vsel %vm16_vm0, %v61_v40, 0.0  ;;  %v80_v46 = vrot.slane %v79_v44, 4 }
  0x28   :  { %v67_v47 = vadd.f32 %v66_v42, %v65_v41  ;;  %v73_v48 = vrot.slane %v72_v45, 4  ;;  %v86_v49 = vsel %vm16_vm0, %v62_v43, 0.0 }
  0x29   :  { %v81_v50 = vadd.f32 %v80_v46, %v79_v44  ;;  %v87_v51 = vrot.slane %v86_v49, 4 }
  0x2a   :  { %v68_v52 = vrot.slane %v67_v47, 2  ;;  %v74_v53 = vadd.f32 %v73_v48, %v72_v45 }
  0x2b   :  { %v82_v54 = vrot.slane %v81_v50, 2  ;;  %v88_v55 = vadd.f32 %v87_v51, %v86_v49 }
  0x2c   :  { %v69_v56 = vadd.f32 %v68_v52, %v67_v47  ;;  %v75_v57 = vrot.slane %v74_v53, 2 }
  0x2d   :  { %v83_v58 = vadd.f32 %v82_v54, %v81_v50  ;;  %v89_v59 = vrot.slane %v88_v55, 2 }
  0x2e   :  { %v70_v60 = vrot.slane %v69_v56, 1  ;;  %v76_v61 = vadd.f32 %v75_v57, %v74_v53 }
  0x2f   :  { %v84_v62 = vrot.slane %v83_v58, 1  ;;  %v90_v63 = vadd.f32 %v89_v59, %v88_v55 }
  0x30   :  { %v71_v0 = vadd.f32 %v70_v60, %v69_v56  ;;  %v77_v1 = vrot.slane %v76_v61, 1 }
  0x31   :  { %v85_v2 = vadd.f32 %v84_v62, %v83_v58  ;;  %v91_v3 = vrot.slane %v90_v63, 1 }
  0x32   :  { %v78_v4 = vadd.f32 %v77_v1, %v76_v61 }
  0x33   :  { %v92_v5 = vadd.f32 %v91_v3, %v90_v63 }
  0x34   :  { %v97_v6 = vcombine.low %v71_v0, %v78_v4 }
  0x35   :  { %v98_v7 = vcombine.low %v85_v2, %v92_v5 }
  0x36   :  { %117 = vrcp.f32 %v97_v6 }
  0x37   :  { %119 = vrcp.f32 %v98_v7 }
  0x43   :  { %v118_v8 = vpop.eup %117 }
  0x44   :  { %v120_v9 = vpop.eup %119  ;;  %v102_v10 = vmul.f32 %v118_v8, %v114_v38 }
  0x45   :  { %v104_v11 = vmul.f32 %v120_v9, %v116_v39 }
  0x46   :  { %105 = vst [vmem:[%s152_s1] sm:$0xff] %v102_v10 }
  0x47   :  { %106 = vst [vmem:[%s152_s1 + $0x8] sm:$0xff] %v104_v11 }

</bundles_post_ra>
